<compile_context>
chip_gen: v7x
topology: tpu7x:2x2x1
jax: 0.10.0
libtpu: 0.0.40
codegen_flags: <defaults>
</compile_context>

<pallas_src>
import jax
import jax.numpy as jnp
from jax.experimental import pallas as pl
from jax.experimental.pallas import tpu as pltpu


def _round_up(x: int, m: int) -> int:
    return (x + m - 1) // m * m


def _device_kind() -> str:
    try:
        return jax.devices()[0].device_kind.lower()
    except Exception:
        return ""


def _vmem_capacity_bytes() -> int:
    try:
        return int(pltpu.get_tpu_info().vmem_capacity_bytes)
    except Exception:
        return 64 << 20  # conservative fallback = v7x per-core VMEM


def _clamp_vmem(request_bytes: int, vmem_cap: int) -> int:
    # Ask for what the tiles need plus headroom; never the whole VMEM
    # (v7x has only 64 MiB — leave >=12 MiB for Mosaic internal scratch).
    return int(min(max(request_bytes + (4 << 20), 16 << 20), vmem_cap - (12 << 20)))


def _a_storage_dtype(kind: str):
    # v5e/v6e: int8 MXU path exists and halves A's HBM bytes again.
    # v7x (and older/unknown chips): keep bf16 (no integer MXU; fp8 inexact).
    if "v5" in kind or "v6" in kind:
        return jnp.int8
    return jnp.bfloat16


# ---------------------------------------------------------------------------
# Kernel 1: projection  H = X @ W  (bf16 output), rows parallel, f_in reduction
# ---------------------------------------------------------------------------
def _project_kernel(x_ref, w_ref, h_ref, acc_ref):
    k = pl.program_id(1)

    @pl.when(k == 0)
    def _():
        acc_ref[...] = jnp.zeros_like(acc_ref)

    acc_ref[...] += jnp.dot(
        x_ref[...], w_ref[...], preferred_element_type=jnp.float32
    )

    @pl.when(k == pl.num_programs(1) - 1)
    def _():
        h_ref[...] = acc_ref[...].astype(h_ref.dtype)


def _project(x_p, w_p, *, tk, vmem_cap):
    n_rows, f_in_p = x_p.shape
    f_out_p = w_p.shape[1]
    tm = 256  # projection is a minor cost; small fixed row tile always divides
    grid = (n_rows // tm, f_in_p // tk)

    vmem_bytes = (
        2 * tm * tk * 4            # X tiles (f32, double buffered)
        + 2 * tk * f_out_p * 4     # W tiles
        + 2 * tm * f_out_p * 2     # H output tiles (bf16)
        + tm * f_out_p * 4         # f32 accumulator
    )
    return pl.pallas_call(
        _project_kernel,
        out_shape=jax.ShapeDtypeStruct((n_rows, f_out_p), jnp.bfloat16),
        grid_spec=pltpu.PrefetchScalarGridSpec(
            num_scalar_prefetch=0,
            grid=grid,
            in_specs=[
                pl.BlockSpec((tm, tk), lambda i, k: (i, k)),
                pl.BlockSpec((tk, f_out_p), lambda i, k: (k, 0)),
            ],
            out_specs=pl.BlockSpec((tm, f_out_p), lambda i, k: (i, 0)),
            scratch_shapes=[pltpu.VMEM((tm, f_out_p), jnp.float32)],
        ),
        compiler_params=pltpu.CompilerParams(
            dimension_semantics=("parallel", "arbitrary"),
            vmem_limit_bytes=_clamp_vmem(vmem_bytes, vmem_cap),
        ),
    )(x_p, w_p)


# ---------------------------------------------------------------------------
# Kernel 2a: aggregation with VMEM-resident H (1-D grid over row tiles)
# ---------------------------------------------------------------------------
def _aggregate_resident_kernel(a_ref, h_ref, inv_deg_ref, o_ref):
    a = a_ref[...]
    if a.dtype != h_ref.dtype:          # int8 storage (v5e/v6e) -> bf16 for MXU
        a = a.astype(h_ref.dtype)
    acc = jnp.dot(a, h_ref[...], preferred_element_type=jnp.float32)
    o_ref[...] = (acc * inv_deg_ref[...]).astype(o_ref.dtype)


def _aggregate_resident(a, h, inv_deg, *, tm, vmem_cap):
    n_rows, n_cols = a.shape
    f_out_p = h.shape[1]
    a_bytes = jnp.dtype(a.dtype).itemsize

    vmem_bytes = (
        2 * tm * n_cols * a_bytes      # A row tiles (double buffered)
        + 2 * n_cols * f_out_p * 2     # resident H (counted x2 for safety)
        + 2 * tm * 4                   # inv_deg tiles
        + 2 * tm * f_out_p * 4         # output tiles
    )
    cost = pl.CostEstimate(
        flops=int(2 * n_rows * n_cols * f_out_p + n_rows * f_out_p),
        transcendentals=0,
        bytes_accessed=int(
            a.size * a_bytes + h.size * 2 + inv_deg.size * 4
            + n_rows * f_out_p * 4
        ),
    )
    return pl.pallas_call(
        _aggregate_resident_kernel,
        out_shape=jax.ShapeDtypeStruct((n_rows, f_out_p), jnp.float32),
        grid_spec=pltpu.PrefetchScalarGridSpec(
            num_scalar_prefetch=0,
            grid=(n_rows // tm,),
            in_specs=[
                pl.BlockSpec((tm, n_cols), lambda i: (i, 0)),
                pl.BlockSpec((n_cols, f_out_p), lambda i: (0, 0)),  # resident
                pl.BlockSpec((tm, 1), lambda i: (i, 0)),
            ],
            out_specs=pl.BlockSpec((tm, f_out_p), lambda i: (i, 0)),
        ),
        compiler_params=pltpu.CompilerParams(
            dimension_semantics=("parallel",),
            vmem_limit_bytes=_clamp_vmem(vmem_bytes, vmem_cap),
        ),
        cost_estimate=cost,
    )(a, h, inv_deg)


# ---------------------------------------------------------------------------
# Kernel 2b: aggregation with K-tiling (rows parallel, K arbitrary, f32 acc)
# ---------------------------------------------------------------------------
def _aggregate_ktiled_kernel(a_ref, h_ref, inv_deg_ref, o_ref, acc_ref):
    k = pl.program_id(1)

    @pl.when(k == 0)
    def _():
        acc_ref[...] = jnp.zeros_like(acc_ref)

    a = a_ref[...]
    if a.dtype != h_ref.dtype:          # int8 storage (v5e/v6e) -> bf16 for MXU
        a = a.astype(h_ref.dtype)
    acc_ref[...] += jnp.dot(a, h_ref[...], preferred_element_type=jnp.float32)

    @pl.when(k == pl.num_programs(1) - 1)
    def _():
        o_ref[...] = (acc_ref[...] * inv_deg_ref[...]).astype(o_ref.dtype)


def _aggregate_ktiled(a, h, inv_deg, *, tm, tk, vmem_cap):
    n_rows, n_cols = a.shape
    f_out_p = h.shape[1]
    a_bytes = jnp.dtype(a.dtype).itemsize
    grid = (n_rows // tm, n_cols // tk)

    vmem_bytes = (
        2 * tm * tk * a_bytes          # A tiles
        + 2 * tk * f_out_p * 2         # H tiles (bf16)
        + 2 * tm * 4                   # inv_deg tiles
        + 2 * tm * f_out_p * 4         # output tiles
        + tm * f_out_p * 4             # f32 accumulator
    )
    cost = pl.CostEstimate(
        flops=int(2 * n_rows * n_cols * f_out_p + n_rows * f_out_p),
        transcendentals=0,
        bytes_accessed=int(
            a.size * a_bytes
            + (n_rows // tm) * h.size * 2      # H is re-streamed per row tile
            + inv_deg.size * 4
            + n_rows * f_out_p * 4
        ),
    )
    # TODO(synk): if profiling still shows exposed DMA on A, add
    # pipeline_mode=pl.Buffered(3) to A's BlockSpec (costs one more tm*tk tile).
    return pl.pallas_call(
        _aggregate_ktiled_kernel,
        out_shape=jax.ShapeDtypeStruct((n_rows, f_out_p), jnp.float32),
        grid_spec=pltpu.PrefetchScalarGridSpec(
            num_scalar_prefetch=0,
            grid=grid,
            in_specs=[
                pl.BlockSpec((tm, tk), lambda i, k: (i, k)),
                pl.BlockSpec((tk, f_out_p), lambda i, k: (k, 0)),
                pl.BlockSpec((tm, 1), lambda i, k: (i, 0)),
            ],
            out_specs=pl.BlockSpec((tm, f_out_p), lambda i, k: (i, 0)),
            scratch_shapes=[pltpu.VMEM((tm, f_out_p), jnp.float32)],
        ),
        compiler_params=pltpu.CompilerParams(
            dimension_semantics=("parallel", "arbitrary"),
            vmem_limit_bytes=_clamp_vmem(vmem_bytes, vmem_cap),
        ),
        cost_estimate=cost,
    )(a, h, inv_deg)


# ---------------------------------------------------------------------------
# Glue (data-dependent scatter) + wrapper
# ---------------------------------------------------------------------------
def xavier_uniform(key, fan_in, fan_out):
    bound = jnp.sqrt(6.0 / (fan_in + fan_out))
    return jax.random.uniform(
        key, (fan_in, fan_out), dtype=jnp.float32, minval=-bound, maxval=bound
    )


def mean_aggregator_forward(x, adj_coo, w, *, tm=512, tk=1024):
    """MeanAggregator forward: scatter_mean(gathered neighbors) @ W."""
    n, f_in = x.shape
    f_out = w.shape[1]

    kind = _device_kind()
    a_dtype = _a_storage_dtype(kind)
    a_itemsize = jnp.dtype(a_dtype).itemsize
    vmem_cap = _vmem_capacity_bytes()

    f_out_p = _round_up(f_out, 128)

    # --- row tiling (output rows / A rows) -------------------------------
    tm = min(tm, _round_up(n, 256))
    if "v7" in kind and n > 256 and _round_up(n, tm) // tm < 2:
        tm = 256  # keep >=2 row tiles so both v7x TensorCores get work
    n_rows_p = _round_up(n, tm)

    # --- column (reduction) dim: resident-H fast path vs K-tiled ---------
    n_cols_base = _round_up(n, 256)
    resident_vmem = (
        2 * tm * n_cols_base * a_itemsize
        + 2 * n_cols_base * f_out_p * 2
        + 2 * tm * f_out_p * 4
        + 2 * tm * 4
    )
    h_resident = resident_vmem <= vmem_cap - (16 << 20)
    if h_resident:
        n_cols_p = n_cols_base
    else:
        tk = min(tk, n_cols_base)
        n_cols_p = _round_up(n, tk)

    # --- plain-JAX glue: dense edge counts + degree ----------------------
    # TODO(synk): for large sparse graphs (E << N^2), replace the dense-A path
    # with a CSR-style scalar-prefetch gather + segment-sum Pallas kernel.
    idx_dtype = adj_coo.dtype
    self_idx = jnp.arange(n, dtype=idx_dtype)
    src_all = jnp.concatenate([adj_coo[0], self_idx])
    dst_all = jnp.concatenate([adj_coo[1], self_idx])

    # Single O(N^2) pass: scatter-add directly at the padded size in bf16
    # (exact for per-edge multiplicities <= 256); narrow extra cast pass only
    # on the int8 (v5e/v6e) path (multiplicities must stay <= 127 there).
    counts = jnp.zeros((n_rows_p, n_cols_p), jnp.bfloat16)
    counts = counts.at[src_all, dst_all].add(1.0)
    if jnp.dtype(a_dtype) != jnp.dtype(jnp.bfloat16):
        counts = counts.astype(a_dtype)

    # Degree from the edge list (self edge adds 1 per real node) — no N^2
    # row-sum.  Padded rows get deg=0 -> inv_deg=1, harmless since their A
    # rows are all zero and they are sliced away.
    deg = jnp.zeros((n_rows_p,), jnp.float32).at[adj_coo[0]].add(1.0)
    deg = deg.at[:n].add(1.0)
    inv_deg = (1.0 / jnp.maximum(deg, 1.0)).reshape(n_rows_p, 1)

    # --- projection inputs (padded to H's row count = A's column count) --
    tk_in = min(1024, _round_up(f_in, 128))
    f_in_p = _round_up(f_in, tk_in)
    x_p = jnp.pad(x.astype(jnp.float32), ((0, n_cols_p - n), (0, f_in_p - f_in)))
    w_p = jnp.pad(w.astype(jnp.float32), ((0, f_in_p - f_in), (0, f_out_p - f_out)))

    h = _project(x_p, w_p, tk=tk_in, vmem_cap=vmem_cap)   # bf16 [n_cols_p, F_out_p]

    if h_resident:
        out_p = _aggregate_resident(counts, h, inv_deg, tm=tm, vmem_cap=vmem_cap)
    else:
        out_p = _aggregate_ktiled(counts, h, inv_deg, tm=tm, tk=tk, vmem_cap=vmem_cap)
    return out_p[:n, :f_out]


def mean_aggregator_ref(x, adj_coo, w):
    """Pure-JAX f32 reference with the original op order (gather -> scatter_mean -> mm)."""
    n, f_in = x.shape
    self_idx = jnp.arange(n, dtype=adj_coo.dtype)
    src = jnp.concatenate([adj_coo[0], self_idx])
    dst = jnp.concatenate([adj_coo[1], self_idx])
    neighbors = x[dst]
    summed = jnp.zeros((n, f_in), jnp.float32).at[src].add(neighbors)
    cnt = jnp.zeros((n, 1), jnp.float32).at[src].add(1.0)
    mean = jnp.where(cnt > 0.0, summed / jnp.maximum(cnt, 1.0), 0.0)
    return mean @ w


if __name__ == "__main__":
    key = jax.random.PRNGKey(0)
    k_x, k_src, k_dst, k_w = jax.random.split(key, 4)

    num_nodes = 16
    f_in = 32
    f_out = 16
    num_edges = 40

    # Node features [N, F_in]
    x = jax.random.normal(k_x, (num_nodes, f_in), dtype=jnp.float32)

    # Random COO adjacency [2, E] (src row, dst row)
    src = jax.random.randint(k_src, (num_edges,), 0, num_nodes, dtype=jnp.int32)
    dst = jax.random.randint(k_dst, (num_edges,), 0, num_nodes, dtype=jnp.int32)
    adj_coo = jnp.stack([src, dst], axis=0)

    # Deterministic xavier-uniform weight [F_in, F_out]
    w = xavier_uniform(k_w, f_in, f_out)

    out = mean_aggregator_forward(x, adj_coo, w)
    out = jax.block_until_ready(out)

    ref = mean_aggregator_ref(x, adj_coo, w)
    assert out.shape == (num_nodes, f_out)
    # bf16 H (and bf16/int8 A storage) -> loosen tolerance vs the f32 reference.
    assert jnp.allclose(out, ref, atol=3e-2, rtol=3e-2), "mismatch vs reference"

    print("KERNEL_OK")
</pallas_src>

<mosaic_0001>
module attributes {stable_mosaic.version = 11 : i64} {
  func.func @_project_kernel(%arg0: i32, %arg1: i32, %arg2: memref<256x128xf32, #tpu.memory_space<vmem>>, %arg3: memref<128x128xf32, #tpu.memory_space<vmem>>, %arg4: memref<256x128xbf16, #tpu.memory_space<vmem>>, %arg5: memref<256x128xf32, #tpu.memory_space<vmem>>) attributes {dimension_semantics = [#tpu.dimension_semantics<parallel>, #tpu.dimension_semantics<arbitrary>], iteration_bounds = array<i64: 1, 1>, scalar_prefetch = 0 : i64, scratch_operands = 1 : i64, tpu.core_type = #tpu.core_type<tc>, window_params = [{transform_indices = @transform_0, window_bounds = array<i64: 256, 128>}, {transform_indices = @transform_1, window_bounds = array<i64: 128, 128>}, {transform_indices = @transform_2, window_bounds = array<i64: 256, 128>}]} {
    %c0_i32 = arith.constant 0 : i32
    %0 = arith.cmpi eq, %arg1, %c0_i32 : i32
    %1 = arith.extui %0 : i1 to i32
    %c0_i32_0 = arith.constant 0 : i32
    %2 = arith.cmpi ne, %1, %c0_i32_0 : i32
    scf.if %2 {
      %cst_10 = arith.constant 0.000000e+00 : f32
      %12 = vector.broadcast %cst_10 : f32 to vector<256x128xf32>
      %c0_11 = arith.constant 0 : index
      %c0_12 = arith.constant 0 : index
      %13 = vector.load %arg5[%c0_11, %c0_12] : memref<256x128xf32, #tpu.memory_space<vmem>>, vector<256x128xf32>
      tpu.vector_store %arg5[%c0_11, %c0_12], %12 {strides = array<i32>} : memref<256x128xf32, #tpu.memory_space<vmem>>, vector<256x128xf32>,
    } else {
    }
    %c0 = arith.constant 0 : index
    %c0_1 = arith.constant 0 : index
    %3 = vector.load %arg5[%c0, %c0_1] : memref<256x128xf32, #tpu.memory_space<vmem>>, vector<256x128xf32>
    %c0_2 = arith.constant 0 : index
    %c0_3 = arith.constant 0 : index
    %4 = vector.load %arg2[%c0_2, %c0_3] : memref<256x128xf32, #tpu.memory_space<vmem>>, vector<256x128xf32>
    %c0_4 = arith.constant 0 : index
    %c0_5 = arith.constant 0 : index
    %5 = vector.load %arg3[%c0_4, %c0_5] : memref<128x128xf32, #tpu.memory_space<vmem>>, vector<128x128xf32>
    %cst = arith.constant dense<0.000000e+00> : vector<256x128xf32>
    %6 = tpu.matmul %4, %5, %cst {dimension_numbers = #tpu.dot_dimension_numbers<[1], [0], [0], [1], [0, 0, 1, 1], [], []>} : vector<256x128xf32>, vector<128x128xf32>, vector<256x128xf32> -> vector<256x128xf32>
    %7 = arith.addf %3, %6 : vector<256x128xf32>
    %c0_6 = arith.constant 0 : index
    %c0_7 = arith.constant 0 : index
    %8 = vector.load %arg5[%c0_6, %c0_7] : memref<256x128xf32, #tpu.memory_space<vmem>>, vector<256x128xf32>
    tpu.vector_store %arg5[%c0_6, %c0_7], %7 {strides = array<i32>} : memref<256x128xf32, #tpu.memory_space<vmem>>, vector<256x128xf32>,
    %c0_i32_8 = arith.constant 0 : i32
    %9 = arith.cmpi eq, %arg1, %c0_i32_8 : i32
    %10 = arith.extui %9 : i1 to i32
    %c0_i32_9 = arith.constant 0 : i32
    %11 = arith.cmpi ne, %10, %c0_i32_9 : i32
    scf.if %11 {
      %c0_10 = arith.constant 0 : index
      %c0_11 = arith.constant 0 : index
      %12 = vector.load %arg5[%c0_10, %c0_11] : memref<256x128xf32, #tpu.memory_space<vmem>>, vector<256x128xf32>
      %13 = arith.truncf %12 : vector<256x128xf32> to vector<256x128xbf16>
      %c0_12 = arith.constant 0 : index
      %c0_13 = arith.constant 0 : index
      %14 = vector.load %arg4[%c0_12, %c0_13] : memref<256x128xbf16, #tpu.memory_space<vmem>>, vector<256x128xbf16>
      tpu.vector_store %arg4[%c0_12, %c0_13], %13 {strides = array<i32>} : memref<256x128xbf16, #tpu.memory_space<vmem>>, vector<256x128xbf16>,
    } else {
    }
    return
  }
  func.func @transform_0(%arg0: i32, %arg1: i32) -> (i32, i32) {
    %c0_i32 = arith.constant 0 : i32
    return %arg0, %arg1 : i32, i32
  }
  func.func @transform_1(%arg0: i32, %arg1: i32) -> (i32, i32) {
    %c0_i32 = arith.constant 0 : i32
    %c0_i32_0 = arith.constant 0 : i32
    return %arg1, %c0_i32 : i32, i32
  }
  func.func @transform_2(%arg0: i32, %arg1: i32) -> (i32, i32) {
    %c0_i32 = arith.constant 0 : i32
    %c0_i32_0 = arith.constant 0 : i32
    return %arg0, %c0_i32 : i32, i32
  }
}

</mosaic_0001>

<bundles_post_ra>
// kernel: tpu_custom_call.1
= control target key start
LH: loop header
LB: loop body
LE: loop exit
PB: predicated region body
PF: predicated region fallthrough
CT: control target
= control target key end

     0   :  { %7 = vsyncpa [#allocation4], 0  ;;  %s1130_s0 = inlined_call_operand.hbm [shape: f32[256,128], index: 0, kind: input, shape index: {}]   ;;  %s1131_s1 = inlined_call_operand.hbm [shape: f32[128,128], index: 1, kind: input, shape index: {}]   ;;  %s1132_s2 = inlined_call_operand.hbm [shape: bf16[256,128], index: 2, kind: output, shape index: {}]  }
   0x1   :  { %8 = vsyncpa [#allocation7], 0 }
   0x2   :  { %9 = vsyncpa [#allocation5], 0  ;;  %s1072_s9 = smov [#allocation3]   ;;  %s1000_s13 = scalar_lea.hbm %s1130_s0, 4096 }
   0x3   :  { %s15_s10 = sshll.u32 %s1072_s9, 4  ;;  %p1001_p0 = scmp.ne.s32.totalorder %s1130_s0, %s1000_s13  ;;  %s16_s10 = int_to_ptr.vmem [resolvable:$true] %s15_s10 }
   0x4   :  { %p1004_p1 = scmp.lt.u32.totalorder %s1000_s13, %s1130_s0 }
   0x6   :  { %p1006_p2 = pnand %p1004_p1, %p1001_p0 }
   0x8   :  { %1009 = shalt.err (!%p1006_p2)
}
   0x9   :  { %s1010_s18 = scalar_lea.vmem %s16_s10, 4096  ;;  %p1015_p4 = scmp.lt.s32.totalorder %s16_s10, %s16_s10 }
   0xa   :  { %p1011_p3 = scmp.ne.s32.totalorder %s16_s10, %s1010_s18  ;;  %p1016_p5 = scmp.lt.s32.totalorder %s1010_s18, %s1010_s18 }
   0xc   :  { %p1017_p6 = por %p1016_p5, %p1015_p4 }
   0xe   :  { %p1018_p7 = pnand %p1017_p6, %p1011_p3 }
  0x10   :  { %1021 = shalt.err (!%p1018_p7)
}
  0x11   :  { %s1073_s19 = smov 128   ;;  %s1074_s20 = smov 8  }
  0x12   :  { %21 = dma.hbm_to_vmem [thread:$0]  %s1130_s0, 4096, %s16_s10, [#allocation4], %s1073_s19, %s1073_s19, %s1074_s20  }
  0x13   :  { %s1075_s23 = smov [#allocation6]   ;;  %s1022_s27 = scalar_lea.hbm %s1131_s1, 2048 }
  0x14   :  { %s27_s24 = sshll.u32 %s1075_s23, 4  ;;  %p1023_p8 = scmp.ne.s32.totalorder %s1131_s1, %s1022_s27  ;;  %s28_s24 = int_to_ptr.vmem [resolvable:$true] %s27_s24 }
  0x15   :  { %p1026_p9 = scmp.lt.u32.totalorder %s1022_s27, %s1131_s1 }
  0x17   :  { %p1028_p10 = pnand %p1026_p9, %p1023_p8 }
  0x19   :  { %1031 = shalt.err (!%p1028_p10)
}
  0x1a   :  { %s1032_s4 = scalar_lea.vmem %s28_s24, 2048  ;;  %p1037_p12 = scmp.lt.s32.totalorder %s28_s24, %s28_s24 }
  0x1b   :  { %p1033_p11 = scmp.ne.s32.totalorder %s28_s24, %s1032_s4  ;;  %p1038_p13 = scmp.lt.s32.totalorder %s1032_s4, %s1032_s4 }
  0x1d   :  { %p1039_p0 = por %p1038_p13, %p1037_p12 }
  0x1f   :  { %p1040_p1 = pnand %p1039_p0, %p1033_p11 }
  0x21   :  { %1043 = shalt.err (!%p1040_p1)
}
  0x22   :  { %33 = dma.hbm_to_vmem [thread:$0]  %s1131_s1, 2048, %s28_s24, [#allocation7], %s1073_s19, %s1073_s19, %s1074_s20  }
  0x23   :  { %1066 = dma.done.wait [#allocation4], 4096  }
  0x24   :  { %1067 = vsyncadd [#allocation4], 4294963200 }
  0x25   :  { %1068 = dma.done.wait [#allocation7], 2048  }
  0x26   :  { %1069 = vsyncadd [#allocation7], 4294965248  ;;  %v140_v0 = vld [vmem:[#allocation6] sm:$0xff]  ;;  %v141_v1 = vld [vmem:[#allocation6 + $0x8] sm:$0xff]  ;;  %s1076_s1 = smov [#allocation8]  }
  0x27   :  { %v142_v2 = vld [vmem:[#allocation6 + $0x10] sm:$0xff]  ;;  %v945_v3 = vpack.c.bf16 %v141_v1, %v140_v0  ;;  %v143_v4 = vld [vmem:[#allocation6 + $0x18] sm:$0xff]  ;;  %v144_v6 = vld [vmem:[#allocation6 + $0x20] sm:$0xff]  ;;  %s645_s6 = sshll.u32 %s1076_s1, 4  ;;  %s646_s6 = int_to_ptr.vmem [resolvable:$true] %s645_s6 }
  0x28   :  { %v949_v5 = vpack.c.bf16 %v143_v4, %v142_v2  ;;  %v145_v7 = vld [vmem:[#allocation6 + $0x28] sm:$0xff]  ;;  %v108_v9 = vld [vmem:[#allocation3] sm:$0xff]  ;;  %v146_v11 = vld [vmem:[#allocation6 + $0x30] sm:$0xff]  ;;  %s1044_s7 = scalar_lea.vmem %s646_s6, 2048  ;;  %p1049_p3 = scmp.lt.s32.totalorder %s646_s6, %s646_s6 }
  0x29   :  { %946 = vmatprep.subr.bf16.mxu0 %v945_v3  ;;  %977 = vmatprep.subr.bf16.mxu1 %v945_v3  ;;  %v953_v8 = vpack.c.bf16 %v145_v7, %v144_v6  ;;  %v124_v10 = vld [vmem:[#allocation3 + $0x80] sm:$0xff]  ;;  %v147_v12 = vld [vmem:[#allocation6 + $0x38] sm:$0xff]  ;;  %v149_v15 = vld [vmem:[#allocation6 + $0x48] sm:$0xff]  ;;  %p1045_p2 = scmp.ne.s32.totalorder %s646_s6, %s1044_s7  ;;  %p1050_p4 = scmp.lt.s32.totalorder %s1044_s7, %s1044_s7 }
  0x2a   :  { %948 = vmatpush3.bf16.msra.mxu0 %v945_v3  ;;  %985 = vmatpush3.bf16.msra.mxu1 %v945_v3  ;;  %v957_v13 = vpack.c.bf16 %v147_v12, %v146_v11  ;;  %v148_v14 = vld [vmem:[#allocation6 + $0x40] sm:$0xff]  ;;  %v150_v17 = vld [vmem:[#allocation6 + $0x50] sm:$0xff]  ;;  %v151_v18 = vld [vmem:[#allocation6 + $0x58] sm:$0xff] }
  0x2b   :  { %950 = vmatprep.subr.bf16.mxu0 %v949_v5  ;;  %978 = vmatprep.subr.bf16.mxu1 %v949_v5  ;;  %v961_v16 = vpack.c.bf16 %v149_v15, %v148_v14  ;;  %v965_v19 = vpack.c.bf16 %v151_v18, %v150_v17  ;;  %v152_v20 = vld [vmem:[#allocation6 + $0x60] sm:$0xff]  ;;  %v153_v21 = vld [vmem:[#allocation6 + $0x68] sm:$0xff]  ;;  %v154_v23 = vld [vmem:[#allocation6 + $0x70] sm:$0xff]  ;;  %p1051_p5 = por %p1050_p4, %p1049_p3 }
  0x2c   :  { %897 = vmatprep.mubr.f32.mxu0 %v108_v9  ;;  %921 = vmatprep.mubr.f32.mxu1 %v124_v10  ;;  %v969_v22 = vpack.c.bf16 %v153_v21, %v152_v20  ;;  %v155_v24 = vld [vmem:[#allocation6 + $0x78] sm:$0xff]  ;;  %v109_v26 = vld [vmem:[#allocation3 + $0x8] sm:$0xff]  ;;  %v110_v28 = vld [vmem:[#allocation3 + $0x10] sm:$0xff] }
  0x2d   :  { %v973_v25 = vpack.c.bf16 %v155_v24, %v154_v23  ;;  %v125_v27 = vld [vmem:[#allocation3 + $0x88] sm:$0xff]  ;;  %v126_v29 = vld [vmem:[#allocation3 + $0x90] sm:$0xff]  ;;  %v111_v30 = vld [vmem:[#allocation3 + $0x18] sm:$0xff]  ;;  %p1052_p6 = pnand %p1051_p5, %p1045_p2 }
  0x2e   :  { %952 = vmatpush3.bf16.msra.mxu0 %v949_v5  ;;  %986 = vmatpush3.bf16.msra.mxu1 %v949_v5  ;;  %v127_v31 = vld [vmem:[#allocation3 + $0x98] sm:$0xff]  ;;  %v112_v32 = vld [vmem:[#allocation3 + $0x20] sm:$0xff]  ;;  %v113_v34 = vld [vmem:[#allocation3 + $0x28] sm:$0xff] }
  0x2f   :  { %954 = vmatprep.subr.bf16.mxu0 %v953_v8  ;;  %979 = vmatprep.subr.bf16.mxu1 %v953_v8  ;;  %v128_v33 = vld [vmem:[#allocation3 + $0xa0] sm:$0xff]  ;;  %v129_v35 = vld [vmem:[#allocation3 + $0xa8] sm:$0xff]  ;;  %v114_v36 = vld [vmem:[#allocation3 + $0x30] sm:$0xff] }
  0x30   :  { %v130_v37 = vld [vmem:[#allocation3 + $0xb0] sm:$0xff]  ;;  %v115_v38 = vld [vmem:[#allocation3 + $0x38] sm:$0xff]  ;;  %v116_v40 = vld [vmem:[#allocation3 + $0x40] sm:$0xff] }
  0x31   :  { %v131_v39 = vld [vmem:[#allocation3 + $0xb8] sm:$0xff]  ;;  %v132_v41 = vld [vmem:[#allocation3 + $0xc0] sm:$0xff]  ;;  %v117_v42 = vld [vmem:[#allocation3 + $0x48] sm:$0xff] }
  0x32   :  { %956 = vmatpush3.bf16.msra.mxu0 %v953_v8  ;;  %987 = vmatpush3.bf16.msra.mxu1 %v953_v8  ;;  %v133_v43 = vld [vmem:[#allocation3 + $0xc8] sm:$0xff]  ;;  %v118_v44 = vld [vmem:[#allocation3 + $0x50] sm:$0xff]  ;;  %v119_v46 = vld [vmem:[#allocation3 + $0x58] sm:$0xff] }
  0x33   :  { %958 = vmatprep.subr.bf16.mxu0 %v957_v13  ;;  %980 = vmatprep.subr.bf16.mxu1 %v957_v13  ;;  %v134_v45 = vld [vmem:[#allocation3 + $0xd0] sm:$0xff]  ;;  %v135_v47 = vld [vmem:[#allocation3 + $0xd8] sm:$0xff]  ;;  %v120_v48 = vld [vmem:[#allocation3 + $0x60] sm:$0xff] }
  0x34   :  { %v136_v49 = vld [vmem:[#allocation3 + $0xe0] sm:$0xff]  ;;  %v121_v50 = vld [vmem:[#allocation3 + $0x68] sm:$0xff]  ;;  %v122_v52 = vld [vmem:[#allocation3 + $0x70] sm:$0xff] }
  0x35   :  { %v137_v51 = vld [vmem:[#allocation3 + $0xe8] sm:$0xff]  ;;  %v138_v53 = vld [vmem:[#allocation3 + $0xf0] sm:$0xff]  ;;  %v123_v54 = vld [vmem:[#allocation3 + $0x78] sm:$0xff] }
  0x36   :  { %960 = vmatpush3.bf16.msra.mxu0 %v957_v13  ;;  %988 = vmatpush3.bf16.msra.mxu1 %v957_v13  ;;  %v139_v55 = vld [vmem:[#allocation3 + $0xf8] sm:$0xff] }
  0x37   :  { %962 = vmatprep.subr.bf16.mxu0 %v961_v16  ;;  %981 = vmatprep.subr.bf16.mxu1 %v961_v16 }
  0x3a   :  { %964 = vmatpush3.bf16.msra.mxu0 %v961_v16  ;;  %989 = vmatpush3.bf16.msra.mxu1 %v961_v16 }
  0x3b   :  { %966 = vmatprep.subr.bf16.mxu0 %v965_v19  ;;  %982 = vmatprep.subr.bf16.mxu1 %v965_v19 }
  0x3e   :  { %968 = vmatpush3.bf16.msra.mxu0 %v965_v19  ;;  %990 = vmatpush3.bf16.msra.mxu1 %v965_v19 }
  0x3f   :  { %970 = vmatprep.subr.bf16.mxu0 %v969_v22  ;;  %983 = vmatprep.subr.bf16.mxu1 %v969_v22 }
  0x42   :  { %972 = vmatpush3.bf16.msra.mxu0 %v969_v22  ;;  %991 = vmatpush3.bf16.msra.mxu1 %v969_v22 }
  0x43   :  { %974 = vmatprep.subr.bf16.mxu0 %v973_v25  ;;  %984 = vmatprep.subr.bf16.mxu1 %v973_v25 }
  0x46   :  { %976 = vmatpush3.bf16.msra.mxu0 %v973_v25  ;;  %992 = vmatpush3.bf16.msra.mxu1 %v973_v25 }
  0x49   :  { %898 = vmatmul.mubr.f32.vlgmr.msra.gmra.mrb[0].mxu0 %v109_v26  ;;  %922 = vmatmul.mubr.f32.vlgmr.msra.gmra.mrb[0].mxu1 %v125_v27 }
  0x4a   :  { %900 = vmatprep.mubr.f32.mxu0 %v110_v28  ;;  %924 = vmatprep.mubr.f32.mxu1 %v126_v29 }
  0x4d   :  { %901 = vmatmul.mubr.f32.gmra.mrb[2].mxu0 %v111_v30  ;;  %925 = vmatmul.mubr.f32.gmra.mrb[2].mxu1 %v127_v31 }
  0x4e   :  { %903 = vmatprep.mubr.f32.mxu0 %v112_v32  ;;  %927 = vmatprep.mubr.f32.mxu1 %v128_v33 }
  0x51   :  { %904 = vmatmul.mubr.f32.gmra.mrb[4].mxu0 %v113_v34  ;;  %928 = vmatmul.mubr.f32.gmra.mrb[4].mxu1 %v129_v35 }
  0x52   :  { %906 = vmatprep.mubr.f32.mxu0 %v114_v36  ;;  %930 = vmatprep.mubr.f32.mxu1 %v130_v37 }
  0x55   :  { %907 = vmatmul.mubr.f32.gmra.mrb[6].mxu0 %v115_v38  ;;  %931 = vmatmul.mubr.f32.gmra.mrb[6].mxu1 %v131_v39 }
  0x56   :  { %909 = vmatprep.mubr.f32.mxu0 %v116_v40  ;;  %933 = vmatprep.mubr.f32.mxu1 %v132_v41 }
  0x59   :  { %910 = vmatmul.mubr.f32.gmra.mrb[8].mxu0 %v117_v42  ;;  %934 = vmatmul.mubr.f32.gmra.mrb[8].mxu1 %v133_v43 }
  0x5a   :  { %912 = vmatprep.mubr.f32.mxu0 %v118_v44  ;;  %936 = vmatprep.mubr.f32.mxu1 %v134_v45 }
  0x5d   :  { %913 = vmatmul.mubr.f32.gmra.mrb[10].mxu0 %v119_v46  ;;  %937 = vmatmul.mubr.f32.gmra.mrb[10].mxu1 %v135_v47 }
  0x5e   :  { %915 = vmatprep.mubr.f32.mxu0 %v120_v48  ;;  %939 = vmatprep.mubr.f32.mxu1 %v136_v49 }
  0x61   :  { %916 = vmatmul.mubr.f32.gmra.mrb[12].mxu0 %v121_v50  ;;  %940 = vmatmul.mubr.f32.gmra.mrb[12].mxu1 %v137_v51 }
  0x62   :  { %918 = vmatprep.mubr.f32.mxu0 %v122_v52  ;;  %942 = vmatprep.mubr.f32.mxu1 %v138_v53 }
  0x65   :  { %919 = vmatmul.mubr.f32.gmra.mrb[14].mxu0 %v123_v54  ;;  %943 = vmatmul.mubr.f32.gmra.mrb[14].mxu1 %v139_v55 }
 0x11c   :  { %v899_v56 = vpop.f32.mrb[0].mxu0  ;;  %v923_v57 = vpop.f32.mrb[0].mxu1 }
 0x11d   :  { %v222_v58 = vpop.f32.mrb[1].mxu0  ;;  %v302_v59 = vpop.f32.mrb[1].mxu1 }
 0x11e   :  { %v725_v60 = vpack.c.bf16 %v899_v56, %v222_v58  ;;  %v765_v61 = vpack.c.bf16 %v923_v57, %v302_v59 }
 0x120   :  { %726 = vst [vmem:[#allocation8] sm:$0xff] %v725_v60   ;;  %809 = vst [vmem:[#allocation8 + $0x40] sm:$0xff] %v765_v61   ;;  %v902_v62 = vpop.f32.mrb[2].mxu0  ;;  %v926_v63 = vpop.f32.mrb[2].mxu1 }
 0x121   :  { %v232_v0 = vpop.f32.mrb[3].mxu0  ;;  %v312_v1 = vpop.f32.mrb[3].mxu1 }
 0x122   :  { %v730_v2 = vpack.c.bf16 %v902_v62, %v232_v0  ;;  %v770_v3 = vpack.c.bf16 %v926_v63, %v312_v1 }
 0x124   :  { %802 = vst [vmem:[#allocation8 + $0x8] sm:$0xff] %v730_v2   ;;  %810 = vst [vmem:[#allocation8 + $0x48] sm:$0xff] %v770_v3   ;;  %v905_v4 = vpop.f32.mrb[4].mxu0  ;;  %v929_v5 = vpop.f32.mrb[4].mxu1 }
 0x125   :  { %v242_v6 = vpop.f32.mrb[5].mxu0  ;;  %v322_v7 = vpop.f32.mrb[5].mxu1 }
 0x126   :  { %v735_v8 = vpack.c.bf16 %v905_v4, %v242_v6  ;;  %v775_v9 = vpack.c.bf16 %v929_v5, %v322_v7 }
 0x128   :  { %803 = vst [vmem:[#allocation8 + $0x10] sm:$0xff] %v735_v8   ;;  %811 = vst [vmem:[#allocation8 + $0x50] sm:$0xff] %v775_v9   ;;  %v908_v10 = vpop.f32.mrb[6].mxu0  ;;  %v932_v11 = vpop.f32.mrb[6].mxu1 }
 0x129   :  { %v252_v12 = vpop.f32.mrb[7].mxu0  ;;  %v332_v13 = vpop.f32.mrb[7].mxu1 }
 0x12a   :  { %v740_v14 = vpack.c.bf16 %v908_v10, %v252_v12  ;;  %v780_v15 = vpack.c.bf16 %v932_v11, %v332_v13 }
 0x12c   :  { %804 = vst [vmem:[#allocation8 + $0x18] sm:$0xff] %v740_v14   ;;  %812 = vst [vmem:[#allocation8 + $0x58] sm:$0xff] %v780_v15   ;;  %v911_v16 = vpop.f32.mrb[8].mxu0  ;;  %v935_v17 = vpop.f32.mrb[8].mxu1 }
 0x12d   :  { %v262_v18 = vpop.f32.mrb[9].mxu0  ;;  %v342_v19 = vpop.f32.mrb[9].mxu1 }
 0x12e   :  { %v745_v20 = vpack.c.bf16 %v911_v16, %v262_v18  ;;  %v785_v21 = vpack.c.bf16 %v935_v17, %v342_v19 }
 0x130   :  { %805 = vst [vmem:[#allocation8 + $0x20] sm:$0xff] %v745_v20   ;;  %813 = vst [vmem:[#allocation8 + $0x60] sm:$0xff] %v785_v21   ;;  %v914_v22 = vpop.f32.mrb[10].mxu0  ;;  %v938_v23 = vpop.f32.mrb[10].mxu1 }
 0x131   :  { %v272_v24 = vpop.f32.mrb[11].mxu0  ;;  %v352_v25 = vpop.f32.mrb[11].mxu1 }
 0x132   :  { %v750_v26 = vpack.c.bf16 %v914_v22, %v272_v24  ;;  %v790_v27 = vpack.c.bf16 %v938_v23, %v352_v25 }
 0x134   :  { %806 = vst [vmem:[#allocation8 + $0x28] sm:$0xff] %v750_v26   ;;  %814 = vst [vmem:[#allocation8 + $0x68] sm:$0xff] %v790_v27   ;;  %v917_v28 = vpop.f32.mrb[12].mxu0  ;;  %v941_v29 = vpop.f32.mrb[12].mxu1 }
 0x135   :  { %v282_v30 = vpop.f32.mrb[13].mxu0  ;;  %v362_v31 = vpop.f32.mrb[13].mxu1 }
 0x136   :  { %v755_v32 = vpack.c.bf16 %v917_v28, %v282_v30  ;;  %v795_v33 = vpack.c.bf16 %v941_v29, %v362_v31 }
 0x138   :  { %807 = vst [vmem:[#allocation8 + $0x30] sm:$0xff] %v755_v32   ;;  %815 = vst [vmem:[#allocation8 + $0x70] sm:$0xff] %v795_v33   ;;  %v920_v34 = vpop.f32.mrb[14].mxu0  ;;  %v944_v35 = vpop.f32.mrb[14].mxu1 }
 0x139   :  { %v292_v36 = vpop.f32.mrb[15].mxu0  ;;  %v372_v37 = vpop.f32.mrb[15].mxu1 }
 0x13a   :  { %v760_v38 = vpack.c.bf16 %v920_v34, %v292_v36  ;;  %v800_v39 = vpack.c.bf16 %v944_v35, %v372_v37 }
 0x13c   :  { %808 = vst [vmem:[#allocation8 + $0x38] sm:$0xff] %v760_v38   ;;  %816 = vst [vmem:[#allocation8 + $0x78] sm:$0xff] %v800_v39  }
 0x13d   :  { %1055 = shalt.err (!%p1052_p6)
}
 0x13e   :  { %s1056_s10 = scalar_lea.hbm %s1132_s2, 2048 }
 0x13f   :  { %p1057_p7 = scmp.ne.s32.totalorder %s1132_s2, %s1056_s10  ;;  %p1060_p8 = scmp.lt.u32.totalorder %s1056_s10, %s1132_s2 }
 0x141   :  { %p1062_p9 = pnand %p1060_p8, %p1057_p7 }
 0x143   :  { %1065 = shalt.err (!%p1062_p9)
}
 0x144   :  { %s1077_s15 = smov 64   ;;  %s1078_s16 = smov 4  }
 0x145   :  { %651 = dma.vmem_to_hbm [thread:$0]  %s646_s6, 2048, %s1132_s2, [#allocation5], %s1077_s15, %s1077_s15, %s1078_s16  }
 0x146   :  { %1070 = dma.done.wait [#allocation5], 2048  }
 0x147   :  { %1071 = vsyncadd [#allocation5], 4294965248 }
 0x148   :  { %655 = vsyncpa [#allocation4], 1 }
 0x149   :  { %656 = vsyncpa [#allocation7], 1 }
 0x14a   :  { %657 = vsyncpa [#allocation5], 1 }

</bundles_post_ra>
